<compile_context>
chip_gen: v6e
topology: v6e:2x2x1
jax: 0.10.0
libtpu: 0.0.40
codegen_flags: <defaults>
</compile_context>

<pallas_src>
import functools

import jax
import jax.numpy as jnp
from jax.experimental import pallas as pl
from jax.experimental.pallas import tpu as pltpu

EPS = 1e-5

# Real / lane-padded feature sizes.
D_IN = 1024      # already a multiple of 128
H1 = 200
H2 = 150
H1_PAD = 256
H2_PAD = 256
OUT_PAD = 128    # real n_classes (<= 128) padded up to one lane-tile

TM_MAX = 1024    # max batch-tile rows (fits VMEM on every generation)


def _round_up(x, m):
    return (x + m - 1) // m * m


def _choose_tm(B):
    """Batch tile: ~half the batch (>=2 grid steps for v7x megacore), rounded
    to 8 sublanes, capped at TM_MAX, never larger than the sublane-rounded B."""
    half = _round_up(pl.cdiv(B, 2), 8)
    tm = max(8, min(TM_MAX, half))
    return min(tm, _round_up(B, 8))


# ---------------------------------------------------------------------------
# Kernel: one batch tile, all three matmuls fused.  BN is pre-folded into the
# Linear params; Dropout is identity (eval mode).
# ---------------------------------------------------------------------------
def mlp_kernel(x_ref, w1_ref, b1_ref, w2_ref, b2_ref, w3_ref, b3_ref, o_ref):
    x = x_ref[...]                                             # (TM, 1024)
    if x.dtype != jnp.bfloat16:                                # static branch
        x = x.astype(jnp.bfloat16)

    # Linear(1024->256pad) [+ folded BN1] + ReLU
    h1 = jnp.dot(x, w1_ref[...], preferred_element_type=jnp.float32)
    h1 = jnp.maximum(h1 + b1_ref[...], 0.0)                    # f32 elementwise

    # Linear(256pad->256pad) [+ folded BN2] + ReLU
    h2 = jnp.dot(h1.astype(jnp.bfloat16), w2_ref[...],
                 preferred_element_type=jnp.float32)
    h2 = jnp.maximum(h2 + b2_ref[...], 0.0)

    # Head: Linear(256pad->128pad)
    o_ref[...] = (
        jnp.dot(h2.astype(jnp.bfloat16), w3_ref[...],
                preferred_element_type=jnp.float32)
        + b3_ref[...]
    )


# ---------------------------------------------------------------------------
# Wrapper
# ---------------------------------------------------------------------------
@functools.partial(jax.jit, static_argnames=("n_classes",))
def mlp_forward(x, packed, *, n_classes):
    """x: (B, 1, 1024) float32 or bfloat16 -> (B, n_classes) float32."""
    x2d = jnp.squeeze(x, axis=1)                 # matches x.squeeze(1)
    B = x2d.shape[0]

    tm = _choose_tm(B)
    grid = (pl.cdiv(B, tm),)                     # no wrapper-side padding of x

    def resident(shape):
        # Same block every grid step -> stays resident in VMEM across tiles.
        return pl.BlockSpec(shape, lambda i: (0, 0))

    flops = 2 * B * (D_IN * H1_PAD + H1_PAD * H2_PAD + H2_PAD * OUT_PAD)
    bytes_accessed = (
        x2d.size * x2d.dtype.itemsize
        + sum(packed[k].size * packed[k].dtype.itemsize
              for k in ("w1", "b1", "w2", "b2", "w3", "b3"))
        + B * OUT_PAD * 4
    )

    out = pl.pallas_call(
        mlp_kernel,
        out_shape=jax.ShapeDtypeStruct((B, OUT_PAD), jnp.float32),
        grid=grid,
        in_specs=[
            pl.BlockSpec((tm, D_IN), lambda i: (i, 0)),            # x (batch-tiled)
            resident((D_IN, H1_PAD)),  resident((1, H1_PAD)),      # w1, b1
            resident((H1_PAD, H2_PAD)), resident((1, H2_PAD)),     # w2, b2
            resident((H2_PAD, OUT_PAD)), resident((1, OUT_PAD)),   # w3, b3
        ],
        out_specs=pl.BlockSpec((tm, OUT_PAD), lambda i: (i, 0)),
        compiler_params=pltpu.CompilerParams(
            dimension_semantics=("parallel",),   # independent batch tiles
            vmem_limit_bytes=32 * 1024 * 1024,   # large tiles on v5e's 16MiB default
        ),
        cost_estimate=pl.CostEstimate(
            flops=flops, transcendentals=0, bytes_accessed=bytes_accessed),
    )(
        x2d,
        packed["w1"], packed["b1"],
        packed["w2"], packed["b2"],
        packed["w3"], packed["b3"],
    )

    return out[:B, :n_classes]


# ---------------------------------------------------------------------------
# Parameters
# ---------------------------------------------------------------------------
def init_params(key, n_classes=17):
    """Raw (unfolded, unpadded, f32) params with NON-trivial BN running stats
    so that the BN-folding path is actually exercised by the checks."""
    ks = jax.random.split(key, 8)

    def linear(kw, kb, fan_in, fan_out):
        bound = 1.0 / jnp.sqrt(fan_in)
        w = jax.random.uniform(kw, (fan_in, fan_out), jnp.float32, -bound, bound)
        b = jax.random.uniform(kb, (fan_out,), jnp.float32, -bound, bound)
        return w, b

    w1, b1 = linear(ks[0], ks[1], D_IN, H1)
    w2, b2 = linear(ks[2], ks[3], H1, H2)
    w3, b3 = linear(ks[4], ks[5], H2, n_classes)

    def bn_stats(k, n):
        kg, kb, km, kv = jax.random.split(k, 4)
        gamma = jax.random.uniform(kg, (n,), jnp.float32, 0.5, 1.5)
        beta = jax.random.uniform(kb, (n,), jnp.float32, -0.2, 0.2)
        mean = 0.1 * jax.random.normal(km, (n,), jnp.float32)
        var = jax.random.uniform(kv, (n,), jnp.float32, 0.5, 1.5)
        return gamma, beta, mean, var

    return {
        "w1": w1, "b1": b1, "bn1": bn_stats(ks[6], H1),
        "w2": w2, "b2": b2, "bn2": bn_stats(ks[7], H2),
        "w3": w3, "b3": b3,
    }


def prepare_params(raw):
    """Fold eval-mode BN into the Linears, lane-pad, and cast weights to bf16."""
    n_classes = raw["w3"].shape[1]
    assert n_classes <= OUT_PAD, "kernel assumes n_classes <= 128"

    def fold(w, b, bn):
        gamma, beta, mean, var = bn
        scale = gamma * jax.lax.rsqrt(var + EPS)          # per-feature
        return w * scale[None, :], (b - mean) * scale + beta

    w1f, b1f = fold(raw["w1"], raw["b1"], raw["bn1"])
    w2f, b2f = fold(raw["w2"], raw["b2"], raw["bn2"])
    w3f, b3f = raw["w3"], raw["b3"]

    def pad_w(w, rows, cols):
        r, c = w.shape
        return jnp.pad(w, ((0, rows - r), (0, cols - c)))

    def pad_b(b, cols):
        return jnp.pad(b, (0, cols - b.shape[0])).reshape(1, cols)

    return {
        "w1": pad_w(w1f, D_IN, H1_PAD).astype(jnp.bfloat16),
        "b1": pad_b(b1f, H1_PAD),
        "w2": pad_w(w2f, H1_PAD, H2_PAD).astype(jnp.bfloat16),
        "b2": pad_b(b2f, H2_PAD),
        "w3": pad_w(w3f, H2_PAD, OUT_PAD).astype(jnp.bfloat16),
        "b3": pad_b(b3f, OUT_PAD),
    }


# ---------------------------------------------------------------------------
# References
# ---------------------------------------------------------------------------
def reference_forward_f32(x, raw):
    """Full-f32 reference matching the PyTorch module in eval() mode."""
    g1, be1, m1, v1 = raw["bn1"]
    g2, be2, m2, v2 = raw["bn2"]
    h = jnp.squeeze(x, axis=1).astype(jnp.float32)
    h = h @ raw["w1"] + raw["b1"]
    h = (h - m1) / jnp.sqrt(v1 + EPS) * g1 + be1
    h = jnp.maximum(h, 0.0)
    h = h @ raw["w2"] + raw["b2"]
    h = (h - m2) / jnp.sqrt(v2 + EPS) * g2 + be2
    h = jnp.maximum(h, 0.0)
    return h @ raw["w3"] + raw["b3"]


def reference_forward_packed(x, packed, n_classes):
    """Mixed-precision JAX mirror of the kernel (same bf16 weights / casts)."""
    h = jnp.squeeze(x, axis=1)
    h = jnp.dot(h.astype(jnp.bfloat16), packed["w1"],
                preferred_element_type=jnp.float32) + packed["b1"]
    h = jnp.maximum(h, 0.0)
    h = jnp.dot(h.astype(jnp.bfloat16), packed["w2"],
                preferred_element_type=jnp.float32) + packed["b2"]
    h = jnp.maximum(h, 0.0)
    h = jnp.dot(h.astype(jnp.bfloat16), packed["w3"],
                preferred_element_type=jnp.float32) + packed["b3"]
    return h[:, :n_classes]


if __name__ == "__main__":
    key = jax.random.PRNGKey(0)
    kx, kp = jax.random.split(key)

    n_classes = 17
    raw = init_params(kp, n_classes=n_classes)
    packed = prepare_params(raw)

    # B=8: single exact tile.  B=37: two tiles with a partial (masked) tail,
    # exercising the no-pad remainder path.
    for B in (8, 37):
        x = jax.random.normal(jax.random.fold_in(kx, B), (B, 1, D_IN), jnp.float32)

        out = jax.block_until_ready(mlp_forward(x, packed, n_classes=n_classes))
        assert out.shape == (B, n_classes), out.shape

        # Strict check: kernel vs a JAX mirror using identical bf16 weights/casts.
        ref_packed = reference_forward_packed(x, packed, n_classes)
        assert jnp.allclose(out, ref_packed, atol=1e-4, rtol=1e-4), \
            f"B={B}: mismatch vs mixed-precision reference"

        # Sanity check: kernel vs full-f32 module semantics (BN unfolded, f32
        # weights); bounds the bf16 weight/activation quantization error.
        ref_f32 = reference_forward_f32(x, raw)
        assert jnp.allclose(out, ref_f32, atol=5e-2, rtol=5e-2), \
            f"B={B}: mismatch vs f32 reference beyond bf16 tolerance"

    print("KERNEL_OK")
</pallas_src>

<mosaic_0001>
module attributes {stable_mosaic.version = 11 : i64} {
  func.func @mlp_kernel(%arg0: i32, %arg1: memref<8x1024xf32, #tpu.memory_space<vmem>>, %arg2: memref<1024x256xbf16, #tpu.memory_space<vmem>>, %arg3: memref<1x256xf32, #tpu.memory_space<vmem>>, %arg4: memref<256x256xbf16, #tpu.memory_space<vmem>>, %arg5: memref<1x256xf32, #tpu.memory_space<vmem>>, %arg6: memref<256x128xbf16, #tpu.memory_space<vmem>>, %arg7: memref<1x128xf32, #tpu.memory_space<vmem>>, %arg8: memref<8x128xf32, #tpu.memory_space<vmem>>) attributes {dimension_semantics = [#tpu.dimension_semantics<parallel>], iteration_bounds = array<i64: 1>, scalar_prefetch = 0 : i64, scratch_operands = 0 : i64, tpu.core_type = #tpu.core_type<tc>, window_params = [{transform_indices = @transform_0, window_bounds = array<i64: 8, 1024>}, {pipeline_mode = #tpu.pipeline_mode<synchronous>, transform_indices = @transform_1, window_bounds = array<i64: 1024, 256>}, {pipeline_mode = #tpu.pipeline_mode<synchronous>, transform_indices = @transform_2, window_bounds = array<i64: 1, 256>}, {pipeline_mode = #tpu.pipeline_mode<synchronous>, transform_indices = @transform_3, window_bounds = array<i64: 256, 256>}, {pipeline_mode = #tpu.pipeline_mode<synchronous>, transform_indices = @transform_4, window_bounds = array<i64: 1, 256>}, {pipeline_mode = #tpu.pipeline_mode<synchronous>, transform_indices = @transform_5, window_bounds = array<i64: 256, 128>}, {pipeline_mode = #tpu.pipeline_mode<synchronous>, transform_indices = @transform_6, window_bounds = array<i64: 1, 128>}, {transform_indices = @transform_7, window_bounds = array<i64: 8, 128>}]} {
    %c0 = arith.constant 0 : index
    %c0_0 = arith.constant 0 : index
    %0 = vector.load %arg1[%c0, %c0_0] : memref<8x1024xf32, #tpu.memory_space<vmem>>, vector<8x1024xf32>
    %1 = arith.truncf %0 : vector<8x1024xf32> to vector<8x1024xbf16>
    %c0_1 = arith.constant 0 : index
    %c0_2 = arith.constant 0 : index
    %2 = vector.load %arg2[%c0_1, %c0_2] : memref<1024x256xbf16, #tpu.memory_space<vmem>>, vector<1024x256xbf16>
    %cst = arith.constant dense<0.000000e+00> : vector<8x256xf32>
    %3 = tpu.matmul %1, %2, %cst {dimension_numbers = #tpu.dot_dimension_numbers<[1], [0], [0], [1], [0, 0, 1, 1], [], []>} : vector<8x1024xbf16>, vector<1024x256xbf16>, vector<8x256xf32> -> vector<8x256xf32>
    %c0_3 = arith.constant 0 : index
    %c0_4 = arith.constant 0 : index
    %4 = vector.load %arg3[%c0_3, %c0_4] : memref<1x256xf32, #tpu.memory_space<vmem>>, vector<1x256xf32>
    %5 = vector.broadcast %4 : vector<1x256xf32> to vector<8x256xf32>
    %6 = arith.addf %3, %5 : vector<8x256xf32>
    %cst_5 = arith.constant 0.000000e+00 : f32
    %7 = vector.broadcast %cst_5 : f32 to vector<8x256xf32>
    %8 = arith.maximumf %6, %7 : vector<8x256xf32>
    %9 = arith.truncf %8 : vector<8x256xf32> to vector<8x256xbf16>
    %c0_6 = arith.constant 0 : index
    %c0_7 = arith.constant 0 : index
    %10 = vector.load %arg4[%c0_6, %c0_7] : memref<256x256xbf16, #tpu.memory_space<vmem>>, vector<256x256xbf16>
    %cst_8 = arith.constant dense<0.000000e+00> : vector<8x256xf32>
    %11 = tpu.matmul %9, %10, %cst_8 {dimension_numbers = #tpu.dot_dimension_numbers<[1], [0], [0], [1], [0, 0, 1, 1], [], []>} : vector<8x256xbf16>, vector<256x256xbf16>, vector<8x256xf32> -> vector<8x256xf32>
    %c0_9 = arith.constant 0 : index
    %c0_10 = arith.constant 0 : index
    %12 = vector.load %arg5[%c0_9, %c0_10] : memref<1x256xf32, #tpu.memory_space<vmem>>, vector<1x256xf32>
    %13 = vector.broadcast %12 : vector<1x256xf32> to vector<8x256xf32>
    %14 = arith.addf %11, %13 : vector<8x256xf32>
    %cst_11 = arith.constant 0.000000e+00 : f32
    %15 = vector.broadcast %cst_11 : f32 to vector<8x256xf32>
    %16 = arith.maximumf %14, %15 : vector<8x256xf32>
    %17 = arith.truncf %16 : vector<8x256xf32> to vector<8x256xbf16>
    %c0_12 = arith.constant 0 : index
    %c0_13 = arith.constant 0 : index
    %18 = vector.load %arg6[%c0_12, %c0_13] : memref<256x128xbf16, #tpu.memory_space<vmem>>, vector<256x128xbf16>
    %cst_14 = arith.constant dense<0.000000e+00> : vector<8x128xf32>
    %19 = tpu.matmul %17, %18, %cst_14 {dimension_numbers = #tpu.dot_dimension_numbers<[1], [0], [0], [1], [0, 0, 1, 1], [], []>} : vector<8x256xbf16>, vector<256x128xbf16>, vector<8x128xf32> -> vector<8x128xf32>
    %c0_15 = arith.constant 0 : index
    %c0_16 = arith.constant 0 : index
    %20 = vector.load %arg7[%c0_15, %c0_16] : memref<1x128xf32, #tpu.memory_space<vmem>>, vector<1x128xf32>
    %21 = vector.broadcast %20 : vector<1x128xf32> to vector<8x128xf32>
    %22 = arith.addf %19, %21 : vector<8x128xf32>
    %c0_17 = arith.constant 0 : index
    %c0_18 = arith.constant 0 : index
    %23 = vector.load %arg8[%c0_17, %c0_18] : memref<8x128xf32, #tpu.memory_space<vmem>>, vector<8x128xf32>
    tpu.vector_store %arg8[%c0_17, %c0_18], %22 {strides = array<i32>} : memref<8x128xf32, #tpu.memory_space<vmem>>, vector<8x128xf32>,
    return
  }
  func.func @transform_0(%arg0: i32) -> (i32, i32) {
    %c0_i32 = arith.constant 0 : i32
    %c0_i32_0 = arith.constant 0 : i32
    return %arg0, %c0_i32 : i32, i32
  }
  func.func @transform_1(%arg0: i32) -> (i32, i32) {
    %c0_i32 = arith.constant 0 : i32
    %c0_i32_0 = arith.constant 0 : i32
    %c0_i32_1 = arith.constant 0 : i32
    return %c0_i32, %c0_i32_0 : i32, i32
  }
  func.func @transform_2(%arg0: i32) -> (i32, i32) {
    %c0_i32 = arith.constant 0 : i32
    %c0_i32_0 = arith.constant 0 : i32
    %c0_i32_1 = arith.constant 0 : i32
    return %c0_i32, %c0_i32_0 : i32, i32
  }
  func.func @transform_3(%arg0: i32) -> (i32, i32) {
    %c0_i32 = arith.constant 0 : i32
    %c0_i32_0 = arith.constant 0 : i32
    %c0_i32_1 = arith.constant 0 : i32
    return %c0_i32, %c0_i32_0 : i32, i32
  }
  func.func @transform_4(%arg0: i32) -> (i32, i32) {
    %c0_i32 = arith.constant 0 : i32
    %c0_i32_0 = arith.constant 0 : i32
    %c0_i32_1 = arith.constant 0 : i32
    return %c0_i32, %c0_i32_0 : i32, i32
  }
  func.func @transform_5(%arg0: i32) -> (i32, i32) {
    %c0_i32 = arith.constant 0 : i32
    %c0_i32_0 = arith.constant 0 : i32
    %c0_i32_1 = arith.constant 0 : i32
    return %c0_i32, %c0_i32_0 : i32, i32
  }
  func.func @transform_6(%arg0: i32) -> (i32, i32) {
    %c0_i32 = arith.constant 0 : i32
    %c0_i32_0 = arith.constant 0 : i32
    %c0_i32_1 = arith.constant 0 : i32
    return %c0_i32, %c0_i32_0 : i32, i32
  }
  func.func @transform_7(%arg0: i32) -> (i32, i32) {
    %c0_i32 = arith.constant 0 : i32
    %c0_i32_0 = arith.constant 0 : i32
    return %arg0, %c0_i32 : i32, i32
  }
}

</mosaic_0001>

<bundles_post_ra>
// kernel: mlp_forward.1
= control target key start
LH: loop header
LB: loop body
LE: loop exit
PB: predicated region body
PF: predicated region fallthrough
CT: control target
= control target key end

     0   :  { %12 = vsyncpa [#allocation3], 0  ;;  %s2122_s0 = inlined_call_operand.vmem [shape: f32[8,1024], index: 0, kind: input, shape index: {}]   ;;  %s2123_s1 = inlined_call_operand.hbm [shape: bf16[1024,256], index: 1, kind: input, shape index: {}]   ;;  %s2124_s2 = inlined_call_operand.vmem [shape: f32[1,256], index: 2, kind: input, shape index: {}]   ;;  %s2125_s3 = inlined_call_operand.hbm [shape: bf16[256,256], index: 3, kind: input, shape index: {}]   ;;  %s2126_s4 = inlined_call_operand.vmem [shape: f32[1,256], index: 4, kind: input, shape index: {}]   ;;  %s2127_s5 = inlined_call_operand.vmem [shape: bf16[256,128], index: 5, kind: input, shape index: {}]   ;;  %s2128_s6 = inlined_call_operand.vmem [shape: f32[1,128], index: 6, kind: input, shape index: {}]   ;;  %s2129_s7 = inlined_call_operand.hbm [shape: f32[8,128], index: 7, kind: output, shape index: {}]  }
   0x1   :  { %13 = vsyncpa [#allocation6], 0 }
   0x2   :  { %14 = vsyncpa [#allocation4], 0  ;;  %s1987_s24 = smov [#allocation2]  }
   0x3   :  { %s22_s25 = sshll.u32 %s1987_s24, 4  ;;  %s23_s25 = int_to_ptr.vmem [resolvable:$true] %s22_s25 }
   0x4   :  { %s1929_s26 = scalar_lea.vmem %s23_s25, 16384  ;;  %p1934_p1 = scmp.lt.s32.totalorder %s23_s25, %s23_s25 }
   0x5   :  { %p1930_p0 = scmp.ne.s32.totalorder %s23_s25, %s1929_s26  ;;  %p1935_p2 = scmp.lt.s32.totalorder %s1929_s26, %s1929_s26 }
   0x7   :  { %p1936_p3 = por %p1935_p2, %p1934_p1 }
   0x9   :  { %p1937_p4 = pnand %p1936_p3, %p1930_p0 }
   0xb   :  { %1940 = shalt.err (!%p1937_p4)
}
   0xc   :  { %s1988_s27 = smov 128   ;;  %s1989_s28 = smov 8  }
   0xd   :  { %28 = dma.hbm_to_vmem [thread:$0]  %s2123_s1, 16384, %s23_s25, [#allocation3], %s1988_s27, %s1988_s27, %s1989_s28  }
   0xe   :  { %s1990_s8 = smov [#allocation5]  }
   0xf   :  { %s36_s9 = sshll.u32 %s1990_s8, 4  ;;  %s37_s9 = int_to_ptr.vmem [resolvable:$true] %s36_s9 }
  0x10   :  { %s1949_s10 = scalar_lea.vmem %s37_s9, 4096  ;;  %p1954_p6 = scmp.lt.s32.totalorder %s37_s9, %s37_s9 }
  0x11   :  { %p1950_p5 = scmp.ne.s32.totalorder %s37_s9, %s1949_s10  ;;  %p1955_p7 = scmp.lt.s32.totalorder %s1949_s10, %s1949_s10 }
  0x13   :  { %p1956_p8 = por %p1955_p7, %p1954_p6 }
  0x15   :  { %p1957_p9 = pnand %p1956_p8, %p1950_p5 }
  0x17   :  { %1960 = shalt.err (!%p1957_p9)
}
  0x18   :  { %42 = dma.hbm_to_vmem [thread:$0]  %s2125_s3, 4096, %s37_s9, [#allocation6], %s1988_s27, %s1988_s27, %s1989_s28  }
  0x19   :  { %1981 = dma.done.wait [#allocation3], 16384  }
  0x1a   :  { %1982 = vsyncadd [#allocation3], 4294950912 }
  0x1b   :  { %1983 = dma.done.wait [#allocation6], 4096  }
  0x1c   :  { %1984 = vsyncadd [#allocation6], 4294963200  ;;  %v1665_v0 = vld [vmem:[#allocation2 + $0x74] ss:$8 sps:$4 sm:$0xff]   ;;  %v1669_v2 = vld [vmem:[#allocation2 + $0x70] ss:$8 sps:$4 sm:$0xff]  }
  0x1d   :  { %v1667_v1 = vld [vmem:[#allocation2 + $0x174] ss:$8 sps:$4 sm:$0xff]   ;;  %852 = vmatprep.subr.bf16.mxu0 %v1665_v0  ;;  %v1670_v3 = vld [vmem:[#allocation2 + $0x170] ss:$8 sps:$4 sm:$0xff]   ;;  %v1671_v4 = vld [vmem:[#allocation2 + $0x64] ss:$8 sps:$4 sm:$0xff]  }
  0x1e   :  { %893 = vmatprep.subr.bf16.mxu1 %v1667_v1  ;;  %853 = vmatpush1.bf16.msra.mxu0 %v1669_v2  ;;  %v1673_v5 = vld [vmem:[#allocation2 + $0x164] ss:$8 sps:$4 sm:$0xff]   ;;  %v1675_v6 = vld [vmem:[#allocation2 + $0x60] ss:$8 sps:$4 sm:$0xff]   ;;  %v1677_v8 = vld [vmem:[#allocation2 + $0x54] ss:$8 sps:$4 sm:$0xff]  }
  0x1f   :  { %894 = vmatpush1.bf16.msra.mxu1 %v1670_v3  ;;  %854 = vmatprep.subr.bf16.mxu0 %v1671_v4  ;;  %v1676_v7 = vld [vmem:[#allocation2 + $0x160] ss:$8 sps:$4 sm:$0xff]   ;;  %v1679_v9 = vld [vmem:[#allocation2 + $0x154] ss:$8 sps:$4 sm:$0xff]   ;;  %v1681_v10 = vld [vmem:[#allocation2 + $0x50] ss:$8 sps:$4 sm:$0xff]  }
  0x20   :  { %895 = vmatprep.subr.bf16.mxu1 %v1673_v5  ;;  %v1682_v11 = vld [vmem:[#allocation2 + $0x150] ss:$8 sps:$4 sm:$0xff]   ;;  %v1683_v12 = vld [vmem:[#allocation2 + $0x44] ss:$8 sps:$4 sm:$0xff]   ;;  %v1687_v14 = vld [vmem:[#allocation2 + $0x40] ss:$8 sps:$4 sm:$0xff]  }
  0x21   :  { %v1685_v13 = vld [vmem:[#allocation2 + $0x144] ss:$8 sps:$4 sm:$0xff]   ;;  %v1688_v15 = vld [vmem:[#allocation2 + $0x140] ss:$8 sps:$4 sm:$0xff]   ;;  %v1689_v16 = vld [vmem:[#allocation2 + $0x34] ss:$8 sps:$4 sm:$0xff]  }
  0x22   :  { %855 = vmatpush1.bf16.msra.mxu0 %v1675_v6  ;;  %v1691_v17 = vld [vmem:[#allocation2 + $0x134] ss:$8 sps:$4 sm:$0xff]   ;;  %v1693_v18 = vld [vmem:[#allocation2 + $0x30] ss:$8 sps:$4 sm:$0xff]   ;;  %v1695_v20 = vld [vmem:[#allocation2 + $0x24] ss:$8 sps:$4 sm:$0xff]  }
  0x23   :  { %896 = vmatpush1.bf16.msra.mxu1 %v1676_v7  ;;  %856 = vmatprep.subr.bf16.mxu0 %v1677_v8  ;;  %v1694_v19 = vld [vmem:[#allocation2 + $0x130] ss:$8 sps:$4 sm:$0xff]   ;;  %v1697_v21 = vld [vmem:[#allocation2 + $0x124] ss:$8 sps:$4 sm:$0xff]   ;;  %v1699_v22 = vld [vmem:[#allocation2 + $0x20] ss:$8 sps:$4 sm:$0xff]  }
  0x24   :  { %897 = vmatprep.subr.bf16.mxu1 %v1679_v9  ;;  %v1700_v23 = vld [vmem:[#allocation2 + $0x120] ss:$8 sps:$4 sm:$0xff]   ;;  %v1701_v24 = vld [vmem:[#allocation2 + $0x14] ss:$8 sps:$4 sm:$0xff]   ;;  %v1705_v26 = vld [vmem:[#allocation2 + $0x10] ss:$8 sps:$4 sm:$0xff]  }
  0x25   :  { %v1703_v25 = vld [vmem:[#allocation2 + $0x114] ss:$8 sps:$4 sm:$0xff]   ;;  %v1706_v27 = vld [vmem:[#allocation2 + $0x110] ss:$8 sps:$4 sm:$0xff]   ;;  %v1707_v28 = vld [vmem:[#allocation2 + $0x4] ss:$8 sps:$4 sm:$0xff]  }
  0x26   :  { %857 = vmatpush1.bf16.msra.mxu0 %v1681_v10  ;;  %v1709_v29 = vld [vmem:[#allocation2 + $0x104] ss:$8 sps:$4 sm:$0xff]   ;;  %v1711_v30 = vld [vmem:[#allocation2] ss:$8 sps:$4 sm:$0xff]   ;;  %v1713_v32 = vld [vmem:[#allocation2 + $0xf4] ss:$8 sps:$4 sm:$0xff]  }
  0x27   :  { %898 = vmatpush1.bf16.msra.mxu1 %v1682_v11  ;;  %858 = vmatprep.subr.bf16.mxu0 %v1683_v12  ;;  %v1712_v31 = vld [vmem:[#allocation2 + $0x100] ss:$8 sps:$4 sm:$0xff]   ;;  %v1715_v33 = vld [vmem:[#allocation2 + $0x1f4] ss:$8 sps:$4 sm:$0xff]   ;;  %v1717_v34 = vld [vmem:[#allocation2 + $0xf0] ss:$8 sps:$4 sm:$0xff]  }
  0x28   :  { %899 = vmatprep.subr.bf16.mxu1 %v1685_v13  ;;  %v1718_v35 = vld [vmem:[#allocation2 + $0x1f0] ss:$8 sps:$4 sm:$0xff]   ;;  %v1719_v36 = vld [vmem:[#allocation2 + $0xe4] ss:$8 sps:$4 sm:$0xff]   ;;  %v1723_v38 = vld [vmem:[#allocation2 + $0xe0] ss:$8 sps:$4 sm:$0xff]  }
  0x29   :  { %v1721_v37 = vld [vmem:[#allocation2 + $0x1e4] ss:$8 sps:$4 sm:$0xff]   ;;  %v1724_v39 = vld [vmem:[#allocation2 + $0x1e0] ss:$8 sps:$4 sm:$0xff]   ;;  %v1725_v40 = vld [vmem:[#allocation2 + $0xd4] ss:$8 sps:$4 sm:$0xff]  }
  0x2a   :  { %859 = vmatpush1.bf16.msra.mxu0 %v1687_v14  ;;  %v1727_v41 = vld [vmem:[#allocation2 + $0x1d4] ss:$8 sps:$4 sm:$0xff]   ;;  %v1729_v42 = vld [vmem:[#allocation2 + $0xd0] ss:$8 sps:$4 sm:$0xff]   ;;  %v1731_v44 = vld [vmem:[#allocation2 + $0xc4] ss:$8 sps:$4 sm:$0xff]  }
  0x2b   :  { %900 = vmatpush1.bf16.msra.mxu1 %v1688_v15  ;;  %860 = vmatprep.subr.bf16.mxu0 %v1689_v16  ;;  %v1730_v43 = vld [vmem:[#allocation2 + $0x1d0] ss:$8 sps:$4 sm:$0xff]   ;;  %v1733_v45 = vld [vmem:[#allocation2 + $0x1c4] ss:$8 sps:$4 sm:$0xff]   ;;  %v1735_v47 = vld [vmem:[#allocation2 + $0xc0] ss:$8 sps:$4 sm:$0xff]  }
  0x2c   :  { %901 = vmatprep.subr.bf16.mxu1 %v1691_v17  ;;  %v57_v46 = vld [vmem:[%s2122_s0 + $0x8] sm:$0xff]  ;;  %v59_v50 = vld [vmem:[%s2122_s0 + $0x18] sm:$0xff]  ;;  %v56_v4 = vld [vmem:[%s2122_s0] sm:$0xff] }
  0x2d   :  { %v1736_v48 = vld [vmem:[#allocation2 + $0x1c0] ss:$8 sps:$4 sm:$0xff]   ;;  %v65_v49 = vpack.c.bf16 %v57_v46, %v57_v46  ;;  %v1737_v51 = vld [vmem:[#allocation2 + $0xb4] ss:$8 sps:$4 sm:$0xff]   ;;  %v67_v52 = vpack.c.bf16 %v59_v50, %v59_v50  ;;  %v1741_v54 = vld [vmem:[#allocation2 + $0xb0] ss:$8 sps:$4 sm:$0xff]   ;;  %v64_v8 = vpack.c.bf16 %v56_v4, %v56_v4 }
  0x2e   :  { %861 = vmatpush1.bf16.msra.mxu0 %v1693_v18  ;;  %v1739_v53 = vld [vmem:[#allocation2 + $0x1b4] ss:$8 sps:$4 sm:$0xff]   ;;  %v1742_v55 = vld [vmem:[#allocation2 + $0x1b0] ss:$8 sps:$4 sm:$0xff]   ;;  %v1743_v56 = vld [vmem:[#allocation2 + $0xa4] ss:$8 sps:$4 sm:$0xff]  }
  0x2f   :  { %902 = vmatpush1.bf16.msra.mxu1 %v1694_v19  ;;  %862 = vmatprep.subr.bf16.mxu0 %v1695_v20  ;;  %v1745_v57 = vld [vmem:[#allocation2 + $0x1a4] ss:$8 sps:$4 sm:$0xff]   ;;  %v1747_v58 = vld [vmem:[#allocation2 + $0xa0] ss:$8 sps:$4 sm:$0xff]   ;;  %v1749_v60 = vld [vmem:[#allocation2 + $0x94] ss:$8 sps:$4 sm:$0xff]  }
  0x30   :  { %903 = vmatprep.subr.bf16.mxu1 %v1697_v21  ;;  %884 = vmatprep.mubr.bf16.mxu0 %v65_v49  ;;  %v1748_v59 = vld [vmem:[#allocation2 + $0x1a0] ss:$8 sps:$4 sm:$0xff]   ;;  %v1751_v61 = vld [vmem:[#allocation2 + $0x194] ss:$8 sps:$4 sm:$0xff]   ;;  %v1753_v62 = vld [vmem:[#allocation2 + $0x90] ss:$8 sps:$4 sm:$0xff]  }
  0x31   :  { %925 = vmatprep.mubr.bf16.mxu1 %v67_v52  ;;  %v1754_v63 = vld [vmem:[#allocation2 + $0x190] ss:$8 sps:$4 sm:$0xff]   ;;  %v1755_v0 = vld [vmem:[#allocation2 + $0x84] ss:$8 sps:$4 sm:$0xff]   ;;  %v1759_v2 = vld [vmem:[#allocation2 + $0x80] ss:$8 sps:$4 sm:$0xff]  }
  0x32   :  { %863 = vmatpush1.bf16.msra.mxu0 %v1699_v22  ;;  %v1757_v1 = vld [vmem:[#allocation2 + $0x184] ss:$8 sps:$4 sm:$0xff]   ;;  %v1760_v3 = vld [vmem:[#allocation2 + $0x180] ss:$8 sps:$4 sm:$0xff]   ;;  %v58_v5 = vld [vmem:[%s2122_s0 + $0x10] sm:$0xff] }
  0x33   :  { %904 = vmatpush1.bf16.msra.mxu1 %v1700_v23  ;;  %864 = vmatprep.subr.bf16.mxu0 %v1701_v24  ;;  %v1763_v6 = vld [vmem:[#allocation2 + $0x274] ss:$8 sps:$4 sm:$0xff]   ;;  %v66_v9 = vpack.c.bf16 %v58_v5, %v58_v5  ;;  %v1761_v10 = vld [vmem:[#allocation2 + $0x270] ss:$8 sps:$4 sm:$0xff]   ;;  %v1769_v12 = vld [vmem:[#allocation2 + $0x264] ss:$8 sps:$4 sm:$0xff]  }
  0x34   :  { %905 = vmatprep.subr.bf16.mxu1 %v1703_v25  ;;  %v1766_v7 = vld [vmem:[#allocation2 + $0x374] ss:$8 sps:$4 sm:$0xff]   ;;  %v1764_v11 = vld [vmem:[#allocation2 + $0x370] ss:$8 sps:$4 sm:$0xff]   ;;  %v1772_v13 = vld [vmem:[#allocation2 + $0x364] ss:$8 sps:$4 sm:$0xff]  }
  0x35   :  { %v1767_v14 = vld [vmem:[#allocation2 + $0x260] ss:$8 sps:$4 sm:$0xff]   ;;  %v1775_v16 = vld [vmem:[#allocation2 + $0x254] ss:$8 sps:$4 sm:$0xff]   ;;  %v1773_v18 = vld [vmem:[#allocation2 + $0x250] ss:$8 sps:$4 sm:$0xff]  }
  0x36   :  { %865 = vmatpush1.bf16.msra.mxu0 %v1705_v26  ;;  %v1770_v15 = vld [vmem:[#allocation2 + $0x360] ss:$8 sps:$4 sm:$0xff]   ;;  %v1778_v17 = vld [vmem:[#allocation2 + $0x354] ss:$8 sps:$4 sm:$0xff]   ;;  %v1776_v19 = vld [vmem:[#allocation2 + $0x350] ss:$8 sps:$4 sm:$0xff]  }
  0x37   :  { %906 = vmatpush1.bf16.msra.mxu1 %v1706_v27  ;;  %866 = vmatprep.subr.bf16.mxu0 %v1707_v28  ;;  %v1781_v20 = vld [vmem:[#allocation2 + $0x244] ss:$8 sps:$4 sm:$0xff]   ;;  %v1779_v22 = vld [vmem:[#allocation2 + $0x240] ss:$8 sps:$4 sm:$0xff]   ;;  %v1787_v24 = vld [vmem:[#allocation2 + $0x234] ss:$8 sps:$4 sm:$0xff]  }
  0x38   :  { %907 = vmatprep.subr.bf16.mxu1 %v1709_v29  ;;  %v1784_v21 = vld [vmem:[#allocation2 + $0x344] ss:$8 sps:$4 sm:$0xff]   ;;  %v1782_v23 = vld [vmem:[#allocation2 + $0x340] ss:$8 sps:$4 sm:$0xff]   ;;  %v1790_v25 = vld [vmem:[#allocation2 + $0x334] ss:$8 sps:$4 sm:$0xff]  }
  0x39   :  { %v1785_v26 = vld [vmem:[#allocation2 + $0x230] ss:$8 sps:$4 sm:$0xff]   ;;  %v1793_v28 = vld [vmem:[#allocation2 + $0x224] ss:$8 sps:$4 sm:$0xff]   ;;  %v1815_v50 = vld [vmem:[#allocation2 + $0x2e0] ss:$8 sps:$4 sm:$0xff]  }
  0x3a   :  { %867 = vmatpush1.bf16.msra.mxu0 %v1711_v30  ;;  %v1788_v27 = vld [vmem:[#allocation2 + $0x330] ss:$8 sps:$4 sm:$0xff]   ;;  %v1796_v29 = vld [vmem:[#allocation2 + $0x324] ss:$8 sps:$4 sm:$0xff]   ;;  %v1791_v30 = vld [vmem:[#allocation2 + $0x220] ss:$8 sps:$4 sm:$0xff]  }
  0x3b   :  { %908 = vmatpush1.bf16.msra.mxu1 %v1712_v31  ;;  %868 = vmatprep.subr.bf16.mxu0 %v1713_v32  ;;  %v1794_v31 = vld [vmem:[#allocation2 + $0x320] ss:$8 sps:$4 sm:$0xff]   ;;  %v1799_v32 = vld [vmem:[#allocation2 + $0x214] ss:$8 sps:$4 sm:$0xff]   ;;  %v1809_v46 = vld [vmem:[#allocation2 + $0x2f0] ss:$8 sps:$4 sm:$0xff]  }
  0x3c   :  { %909 = vmatprep.subr.bf16.mxu1 %v1715_v33  ;;  %v1802_v33 = vld [vmem:[#allocation2 + $0x314] ss:$8 sps:$4 sm:$0xff]   ;;  %v1820_v49 = vld [vmem:[#allocation2 + $0x3e4] ss:$8 sps:$4 sm:$0xff]  }
  0x3d   :  { %v1823_v52 = vld [vmem:[#allocation2 + $0x2d4] ss:$8 sps:$4 sm:$0xff]  }
  0x3e   :  { %869 = vmatpush2.bf16.msra.mxu0 %v1717_v34  ;;  %v1797_v34 = vld [vmem:[#allocation2 + $0x210] ss:$8 sps:$4 sm:$0xff]   ;;  %v1847_v4 = vld [vmem:[#allocation2 + $0x294] ss:$8 sps:$4 sm:$0xff]  }
  0x3f   :  { %910 = vmatpush2.bf16.msra.mxu1 %v1718_v35  ;;  %870 = vmatprep.subr.bf16.mxu0 %v1719_v36  ;;  %v61_v35 = vld [vmem:[%s2122_s0 + $0x28] sm:$0xff]  ;;  %v1800_v36 = vld [vmem:[#allocation2 + $0x310] ss:$8 sps:$4 sm:$0xff]   ;;  %v1850_v5 = vld [vmem:[#allocation2 + $0x394] ss:$8 sps:$4 sm:$0xff]  }
  0x40   :  { %911 = vmatprep.subr.bf16.mxu1 %v1721_v37  ;;  %v1805_v37 = vld [vmem:[#allocation2 + $0x204] ss:$8 sps:$4 sm:$0xff]  }
  0x42   :  { %871 = vmatpush2.bf16.msra.mxu0 %v1723_v38  ;;  %v69_v38 = vpack.c.bf16 %v61_v35, %v61_v35  ;;  %v1884_v35 = vld [vmem:[#allocation5 + $0xe0] ss:$8 sps:$4 sm:$0xff]  }
  0x43   :  { %912 = vmatpush2.bf16.msra.mxu1 %v1724_v39  ;;  %872 = vmatprep.subr.bf16.mxu0 %v1725_v40  ;;  %v63_v39 = vld [vmem:[%s2122_s0 + $0x38] sm:$0xff]  ;;  %v1808_v40 = vld [vmem:[#allocation2 + $0x304] ss:$8 sps:$4 sm:$0xff]  }
  0x44   :  { %913 = vmatprep.subr.bf16.mxu1 %v1727_v41  ;;  %v71_v41 = vpack.c.bf16 %v63_v39, %v63_v39  ;;  %v1890_v39 = vld [vmem:[#allocation5 + $0xc0] ss:$8 sps:$4 sm:$0xff]  }
  0x46   :  { %873 = vmatpush2.bf16.msra.mxu0 %v1729_v42  ;;  %v1803_v42 = vld [vmem:[#allocation2 + $0x200] ss:$8 sps:$4 sm:$0xff]  }
  0x47   :  { %914 = vmatpush2.bf16.msra.mxu1 %v1730_v43  ;;  %874 = vmatprep.subr.bf16.mxu0 %v1731_v44  ;;  %v1806_v43 = vld [vmem:[#allocation2 + $0x300] ss:$8 sps:$4 sm:$0xff]   ;;  %v1811_v44 = vld [vmem:[#allocation2 + $0x2f4] ss:$8 sps:$4 sm:$0xff]  }
  0x48   :  { %915 = vmatprep.subr.bf16.mxu1 %v1733_v45  ;;  %v1814_v45 = vld [vmem:[#allocation2 + $0x3f4] ss:$8 sps:$4 sm:$0xff]  }
  0x4a   :  { %875 = vmatpush2.bf16.msra.mxu0 %v1735_v47  ;;  %v1812_v47 = vld [vmem:[#allocation2 + $0x3f0] ss:$8 sps:$4 sm:$0xff]  }
  0x4b   :  { %916 = vmatpush2.bf16.msra.mxu1 %v1736_v48  ;;  %876 = vmatprep.subr.bf16.mxu0 %v1737_v51  ;;  %v1817_v48 = vld [vmem:[#allocation2 + $0x2e4] ss:$8 sps:$4 sm:$0xff]   ;;  %v1818_v51 = vld [vmem:[#allocation2 + $0x3e0] ss:$8 sps:$4 sm:$0xff]  }
  0x4c   :  { %917 = vmatprep.subr.bf16.mxu1 %v1739_v53  ;;  %v1826_v53 = vld [vmem:[#allocation2 + $0x3d4] ss:$8 sps:$4 sm:$0xff]  }
  0x4e   :  { %877 = vmatpush2.bf16.msra.mxu0 %v1741_v54  ;;  %v1821_v54 = vld [vmem:[#allocation2 + $0x2d0] ss:$8 sps:$4 sm:$0xff]  }
  0x4f   :  { %918 = vmatpush2.bf16.msra.mxu1 %v1742_v55  ;;  %878 = vmatprep.subr.bf16.mxu0 %v1743_v56  ;;  %v1824_v55 = vld [vmem:[#allocation2 + $0x3d0] ss:$8 sps:$4 sm:$0xff]   ;;  %v1829_v56 = vld [vmem:[#allocation2 + $0x2c4] ss:$8 sps:$4 sm:$0xff]  }
  0x50   :  { %919 = vmatprep.subr.bf16.mxu1 %v1745_v57  ;;  %v1832_v57 = vld [vmem:[#allocation2 + $0x3c4] ss:$8 sps:$4 sm:$0xff]  }
  0x52   :  { %879 = vmatpush2.bf16.msra.mxu0 %v1747_v58  ;;  %v1827_v58 = vld [vmem:[#allocation2 + $0x2c0] ss:$8 sps:$4 sm:$0xff]  }
  0x53   :  { %920 = vmatpush2.bf16.msra.mxu1 %v1748_v59  ;;  %880 = vmatprep.subr.bf16.mxu0 %v1749_v60  ;;  %v1830_v59 = vld [vmem:[#allocation2 + $0x3c0] ss:$8 sps:$4 sm:$0xff]   ;;  %v1835_v60 = vld [vmem:[#allocation2 + $0x2b4] ss:$8 sps:$4 sm:$0xff]  }
  0x54   :  { %921 = vmatprep.subr.bf16.mxu1 %v1751_v61  ;;  %v1838_v61 = vld [vmem:[#allocation2 + $0x3b4] ss:$8 sps:$4 sm:$0xff]  }
  0x56   :  { %881 = vmatpush2.bf16.msra.mxu0 %v1753_v62  ;;  %v1833_v62 = vld [vmem:[#allocation2 + $0x2b0] ss:$8 sps:$4 sm:$0xff]  }
  0x57   :  { %922 = vmatpush2.bf16.msra.mxu1 %v1754_v63  ;;  %882 = vmatprep.subr.bf16.mxu0 %v1755_v0  ;;  %v1836_v63 = vld [vmem:[#allocation2 + $0x3b0] ss:$8 sps:$4 sm:$0xff]   ;;  %v1841_v0 = vld [vmem:[#allocation2 + $0x2a4] ss:$8 sps:$4 sm:$0xff]  }
  0x58   :  { %923 = vmatprep.subr.bf16.mxu1 %v1757_v1  ;;  %v1844_v1 = vld [vmem:[#allocation2 + $0x3a4] ss:$8 sps:$4 sm:$0xff]  }
  0x5a   :  { %883 = vmatpush2.bf16.msra.mxu0 %v1759_v2  ;;  %v1839_v2 = vld [vmem:[#allocation2 + $0x2a0] ss:$8 sps:$4 sm:$0xff]  }
  0x5b   :  { %924 = vmatpush2.bf16.msra.mxu1 %v1760_v3  ;;  %934 = vmatprep.subr.bf16.mxu0 %v1763_v6  ;;  %v1842_v3 = vld [vmem:[#allocation2 + $0x3a0] ss:$8 sps:$4 sm:$0xff]   ;;  %v1845_v6 = vld [vmem:[#allocation2 + $0x290] ss:$8 sps:$4 sm:$0xff]  }
  0x5c   :  { %975 = vmatprep.subr.bf16.mxu1 %v1766_v7  ;;  %v1848_v7 = vld [vmem:[#allocation2 + $0x390] ss:$8 sps:$4 sm:$0xff]  }
  0x5d   :  { %885 = vmatmul.mubr.bf16.vlgmr.msra.gmra.mxu0 %v64_v8  ;;  %v1853_v8 = vld [vmem:[#allocation2 + $0x284] ss:$8 sps:$4 sm:$0xff]  }
  0x5e   :  { %926 = vmatmul.mubr.bf16.vlgmr.msra.gmra.mxu1 %v66_v9  ;;  %935 = vmatpush1.bf16.msra.mxu0 %v1761_v10  ;;  %v1856_v9 = vld [vmem:[#allocation2 + $0x384] ss:$8 sps:$4 sm:$0xff]   ;;  %v1851_v10 = vld [vmem:[#allocation2 + $0x280] ss:$8 sps:$4 sm:$0xff]  }
  0x5f   :  { %976 = vmatpush1.bf16.msra.mxu1 %v1764_v11  ;;  %936 = vmatprep.subr.bf16.mxu0 %v1769_v12  ;;  %v1854_v11 = vld [vmem:[#allocation2 + $0x380] ss:$8 sps:$4 sm:$0xff]  }
  0x60   :  { %977 = vmatprep.subr.bf16.mxu1 %v1772_v13  ;;  %966 = vmatprep.mubr.bf16.mxu0 %v69_v38  ;;  %v60_v12 = vld [vmem:[%s2122_s0 + $0x20] sm:$0xff]  ;;  %v62_v13 = vld [vmem:[%s2122_s0 + $0x30] sm:$0xff] }
  0x61   :  { %1007 = vmatprep.mubr.bf16.mxu1 %v71_v41  ;;  %v1892_v38 = vld [vmem:[#allocation5 + $0xc4] ss:$8 sps:$4 sm:$0xff]   ;;  %v1893_v41 = vld [vmem:[#allocation5 + $0xb0] ss:$8 sps:$4 sm:$0xff]  }
  0x62   :  { %937 = vmatpush1.bf16.msra.mxu0 %v1767_v14  ;;  %v68_v14 = vpack.c.bf16 %v60_v12, %v60_v12 }
  0x63   :  { %978 = vmatpush1.bf16.msra.mxu1 %v1770_v15  ;;  %938 = vmatprep.subr.bf16.mxu0 %v1775_v16  ;;  %v70_v15 = vpack.c.bf16 %v62_v13, %v62_v13  ;;  %v1857_v16 = vld [vmem:[#allocation5 + $0x70] ss:$8 sps:$4 sm:$0xff]  }
  0x64   :  { %979 = vmatprep.subr.bf16.mxu1 %v1778_v17  ;;  %v1859_v17 = vld [vmem:[#allocation5 + $0x74] ss:$8 sps:$4 sm:$0xff]  }
  0x66   :  { %939 = vmatpush1.bf16.msra.mxu0 %v1773_v18  ;;  %v1862_v18 = vld [vmem:[#allocation5 + $0x64] ss:$8 sps:$4 sm:$0xff]  }
  0x67   :  { %980 = vmatpush1.bf16.msra.mxu1 %v1776_v19  ;;  %940 = vmatprep.subr.bf16.mxu0 %v1781_v20  ;;  %v1860_v19 = vld [vmem:[#allocation5 + $0x60] ss:$8 sps:$4 sm:$0xff]   ;;  %v1865_v20 = vld [vmem:[#allocation5 + $0x54] ss:$8 sps:$4 sm:$0xff]  }
  0x68   :  { %981 = vmatprep.subr.bf16.mxu1 %v1784_v21  ;;  %v1863_v21 = vld [vmem:[#allocation5 + $0x50] ss:$8 sps:$4 sm:$0xff]  }
  0x6a   :  { %941 = vmatpush1.bf16.msra.mxu0 %v1779_v22  ;;  %v1868_v22 = vld [vmem:[#allocation5 + $0x44] ss:$8 sps:$4 sm:$0xff]  }
  0x6b   :  { %982 = vmatpush1.bf16.msra.mxu1 %v1782_v23  ;;  %942 = vmatprep.subr.bf16.mxu0 %v1787_v24  ;;  %v1866_v23 = vld [vmem:[#allocation5 + $0x40] ss:$8 sps:$4 sm:$0xff]   ;;  %v1871_v24 = vld [vmem:[#allocation5 + $0x34] ss:$8 sps:$4 sm:$0xff]  }
  0x6c   :  { %983 = vmatprep.subr.bf16.mxu1 %v1790_v25  ;;  %v1869_v25 = vld [vmem:[#allocation5 + $0x30] ss:$8 sps:$4 sm:$0xff]  }
  0x6e   :  { %943 = vmatpush1.bf16.msra.mxu0 %v1785_v26  ;;  %v1874_v26 = vld [vmem:[#allocation5 + $0x24] ss:$8 sps:$4 sm:$0xff]  }
  0x6f   :  { %984 = vmatpush1.bf16.msra.mxu1 %v1788_v27  ;;  %944 = vmatprep.subr.bf16.mxu0 %v1793_v28  ;;  %v1872_v27 = vld [vmem:[#allocation5 + $0x20] ss:$8 sps:$4 sm:$0xff]   ;;  %v1877_v28 = vld [vmem:[#allocation5 + $0x14] ss:$8 sps:$4 sm:$0xff]  }
  0x70   :  { %985 = vmatprep.subr.bf16.mxu1 %v1796_v29  ;;  %v1875_v29 = vld [vmem:[#allocation5 + $0x10] ss:$8 sps:$4 sm:$0xff]  }
  0x72   :  { %945 = vmatpush1.bf16.msra.mxu0 %v1791_v30  ;;  %v1880_v30 = vld [vmem:[#allocation5 + $0x4] ss:$8 sps:$4 sm:$0xff]  }
  0x73   :  { %986 = vmatpush1.bf16.msra.mxu1 %v1794_v31  ;;  %946 = vmatprep.subr.bf16.mxu0 %v1799_v32  ;;  %v1878_v31 = vld [vmem:[#allocation5] ss:$8 sps:$4 sm:$0xff]   ;;  %v1883_v32 = vld [vmem:[#allocation5 + $0xf4] ss:$8 sps:$4 sm:$0xff]  }
  0x74   :  { %987 = vmatprep.subr.bf16.mxu1 %v1802_v33  ;;  %v1881_v33 = vld [vmem:[#allocation5 + $0xf0] ss:$8 sps:$4 sm:$0xff]  }
  0x76   :  { %947 = vmatpush1.bf16.msra.mxu0 %v1797_v34  ;;  %v1886_v34 = vld [vmem:[#allocation5 + $0xe4] ss:$8 sps:$4 sm:$0xff]  }
  0x77   :  { %988 = vmatpush1.bf16.msra.mxu1 %v1800_v36  ;;  %948 = vmatprep.subr.bf16.mxu0 %v1805_v37  ;;  %v1889_v36 = vld [vmem:[#allocation5 + $0xd4] ss:$8 sps:$4 sm:$0xff]   ;;  %v1887_v37 = vld [vmem:[#allocation5 + $0xd0] ss:$8 sps:$4 sm:$0xff]  }
  0x78   :  { %989 = vmatprep.subr.bf16.mxu1 %v1808_v40  ;;  %v1895_v40 = vld [vmem:[#allocation5 + $0xb4] ss:$8 sps:$4 sm:$0xff]  }
  0x7a   :  { %949 = vmatpush1.bf16.msra.mxu0 %v1803_v42  ;;  %v1898_v42 = vld [vmem:[#allocation5 + $0xa4] ss:$8 sps:$4 sm:$0xff]  }
  0x7b   :  { %990 = vmatpush1.bf16.msra.mxu1 %v1806_v43  ;;  %950 = vmatprep.subr.bf16.mxu0 %v1811_v44  ;;  %v1896_v43 = vld [vmem:[#allocation5 + $0xa0] ss:$8 sps:$4 sm:$0xff]   ;;  %v1901_v44 = vld [vmem:[#allocation5 + $0x94] ss:$8 sps:$4 sm:$0xff]  }
  0x7c   :  { %991 = vmatprep.subr.bf16.mxu1 %v1814_v45  ;;  %v1899_v45 = vld [vmem:[#allocation5 + $0x90] ss:$8 sps:$4 sm:$0xff]  }
  0x7e   :  { %951 = vmatpush2.bf16.msra.mxu0 %v1809_v46  ;;  %v1904_v46 = vld [vmem:[#allocation5 + $0x84] ss:$8 sps:$4 sm:$0xff]  }
  0x7f   :  { %992 = vmatpush2.bf16.msra.mxu1 %v1812_v47  ;;  %952 = vmatprep.subr.bf16.mxu0 %v1817_v48  ;;  %v1902_v47 = vld [vmem:[#allocation5 + $0x80] ss:$8 sps:$4 sm:$0xff]   ;;  %v1905_v48 = vld [vmem:[%s2127_s5 + $0x78] sm:$0xff]  }
  0x80   :  { %993 = vmatprep.subr.bf16.mxu1 %v1820_v49  ;;  %v1906_v49 = vld [vmem:[%s2127_s5 + $0x38] sm:$0xff]  }
  0x82   :  { %953 = vmatpush2.bf16.msra.mxu0 %v1815_v50  ;;  %v1907_v50 = vld [vmem:[%s2127_s5 + $0x70] sm:$0xff]  }
  0x83   :  { %994 = vmatpush2.bf16.msra.mxu1 %v1818_v51  ;;  %954 = vmatprep.subr.bf16.mxu0 %v1823_v52  ;;  %v1908_v51 = vld [vmem:[%s2127_s5 + $0x30] sm:$0xff]   ;;  %v1909_v52 = vld [vmem:[%s2127_s5 + $0x68] sm:$0xff]  }
  0x84   :  { %995 = vmatprep.subr.bf16.mxu1 %v1826_v53  ;;  %v1910_v53 = vld [vmem:[%s2127_s5 + $0x28] sm:$0xff]  }
  0x86   :  { %955 = vmatpush2.bf16.msra.mxu0 %v1821_v54  ;;  %v1911_v54 = vld [vmem:[%s2127_s5 + $0x60] sm:$0xff]  }
  0x87   :  { %996 = vmatpush2.bf16.msra.mxu1 %v1824_v55  ;;  %956 = vmatprep.subr.bf16.mxu0 %v1829_v56  ;;  %v1912_v55 = vld [vmem:[%s2127_s5 + $0x20] sm:$0xff]   ;;  %v1913_v56 = vld [vmem:[%s2127_s5 + $0x58] sm:$0xff]  }
  0x88   :  { %997 = vmatprep.subr.bf16.mxu1 %v1832_v57  ;;  %v1914_v57 = vld [vmem:[%s2127_s5 + $0x18] sm:$0xff]  }
  0x8a   :  { %957 = vmatpush2.bf16.msra.mxu0 %v1827_v58  ;;  %v1915_v58 = vld [vmem:[%s2127_s5 + $0x50] sm:$0xff]  }
  0x8b   :  { %998 = vmatpush2.bf16.msra.mxu1 %v1830_v59  ;;  %958 = vmatprep.subr.bf16.mxu0 %v1835_v60  ;;  %v1916_v59 = vld [vmem:[%s2127_s5 + $0x10] sm:$0xff]  }
  0x8c   :  { %999 = vmatprep.subr.bf16.mxu1 %v1838_v61 }
  0x8e   :  { %959 = vmatpush2.bf16.msra.mxu0 %v1833_v62 }
  0x8f   :  { %1000 = vmatpush2.bf16.msra.mxu1 %v1836_v63  ;;  %960 = vmatprep.subr.bf16.mxu0 %v1841_v0 }
  0x90   :  { %1001 = vmatprep.subr.bf16.mxu1 %v1844_v1 }
  0x92   :  { %961 = vmatpush2.bf16.msra.mxu0 %v1839_v2 }
  0x93   :  { %1002 = vmatpush2.bf16.msra.mxu1 %v1842_v3  ;;  %962 = vmatprep.subr.bf16.mxu0 %v1847_v4  ;;  %v202_v4 = vlaneseq }
  0x94   :  { %1003 = vmatprep.subr.bf16.mxu1 %v1850_v5 }
  0x95   :  { %v203_v5 = vshrl.u32 %v202_v4, 7 }
  0x96   :  { %963 = vmatpush2.bf16.msra.mxu0 %v1845_v6 }
  0x97   :  { %1004 = vmatpush2.bf16.msra.mxu1 %v1848_v7  ;;  %964 = vmatprep.subr.bf16.mxu0 %v1853_v8  ;;  %v204_v6 = vsub.s32 0, %v203_v5  ;;  %v200_v7 = vld [vmem:[%s2124_s2] sm:$0x3]  ;;  %v208_v8 = vsub.s32 1, %v203_v5 }
  0x98   :  { %1005 = vmatprep.subr.bf16.mxu1 %v1856_v9 }
  0x99   :  { %v205_v9 = vrot.slane %v200_v7, %v204_v6 }
  0x9a   :  { %965 = vmatpush2.bf16.msra.mxu0 %v1851_v10  ;;  %v209_v10 = vrot.slane %v200_v7, %v208_v8 }
  0x9b   :  { %1006 = vmatpush2.bf16.msra.mxu1 %v1854_v11  ;;  %1224 = vmatprep.subr.bf16.mxu0 %v1859_v17 }
  0x9c   :  { %1638 = vmatprep.subr.bf16.mxu1 %v1905_v48 }
  0x9d   :  { %967 = vmatmul.mubr.bf16.vlgmr.msra.gmra.mxu0 %v68_v14 }
  0x9e   :  { %1008 = vmatmul.mubr.bf16.vlgmr.msra.gmra.mxu1 %v70_v15  ;;  %1225 = vmatpush1.bf16.msra.mxu0 %v1857_v16 }
  0x9f   :  { %1226 = vmatprep.subr.bf16.mxu0 %v1862_v18  ;;  %1639 = vmatpush3.bf16.msra.mxu1 %v1906_v49  ;;  %v1621_v49 = vld [vmem:[%s2128_s6] ss:$0 sm:$0xff] }
  0xa0   :  { %1640 = vmatprep.subr.bf16.mxu1 %v1907_v50 }
  0xa2   :  { %1227 = vmatpush1.bf16.msra.mxu0 %v1860_v19 }
  0xa3   :  { %1228 = vmatprep.subr.bf16.mxu0 %v1865_v20  ;;  %1641 = vmatpush3.bf16.msra.mxu1 %v1908_v51 }
  0xa4   :  { %1642 = vmatprep.subr.bf16.mxu1 %v1909_v52 }
  0xa6   :  { %1229 = vmatpush1.bf16.msra.mxu0 %v1863_v21 }
  0xa7   :  { %1230 = vmatprep.subr.bf16.mxu0 %v1868_v22  ;;  %1643 = vmatpush3.bf16.msra.mxu1 %v1910_v53 }
  0xa8   :  { %1644 = vmatprep.subr.bf16.mxu1 %v1911_v54 }
  0xaa   :  { %1231 = vmatpush1.bf16.msra.mxu0 %v1866_v23 }
  0xab   :  { %1232 = vmatprep.subr.bf16.mxu0 %v1871_v24  ;;  %1645 = vmatpush3.bf16.msra.mxu1 %v1912_v55 }
  0xac   :  { %1646 = vmatprep.subr.bf16.mxu1 %v1913_v56 }
  0xae   :  { %1233 = vmatpush1.bf16.msra.mxu0 %v1869_v25 }
  0xaf   :  { %1234 = vmatprep.subr.bf16.mxu0 %v1874_v26  ;;  %1647 = vmatpush3.bf16.msra.mxu1 %v1914_v57 }
  0xb0   :  { %1648 = vmatprep.subr.bf16.mxu1 %v1915_v58 }
  0xb2   :  { %1235 = vmatpush1.bf16.msra.mxu0 %v1872_v27 }
  0xb3   :  { %1236 = vmatprep.subr.bf16.mxu0 %v1877_v28  ;;  %1649 = vmatpush3.bf16.msra.mxu1 %v1916_v59 }
  0xb6   :  { %1237 = vmatpush1.bf16.msra.mxu0 %v1875_v29 }
  0xb7   :  { %1238 = vmatprep.subr.bf16.mxu0 %v1880_v30 }
  0xba   :  { %1239 = vmatpush1.bf16.msra.mxu0 %v1878_v31  ;;  %v1917_v31 = vld [vmem:[%s2127_s5 + $0x48] sm:$0xff]  }
  0xbb   :  { %1240 = vmatprep.subr.bf16.mxu0 %v1883_v32  ;;  %v1918_v32 = vld [vmem:[%s2127_s5 + $0x8] sm:$0xff]   ;;  %1650 = vmatprep.subr.bf16.mxu1 %v1917_v31 }
  0xbc   :  { %1651 = vmatpush3.bf16.msra.mxu1 %v1918_v32 }
  0xbe   :  { %1241 = vmatpush2.bf16.msra.mxu0 %v1881_v33  ;;  %v1919_v33 = vld [vmem:[%s2127_s5 + $0x40] sm:$0xff]  }
  0xbf   :  { %1242 = vmatprep.subr.bf16.mxu0 %v1886_v34  ;;  %v1920_v34 = vld [vmem:[%s2127_s5] sm:$0xff]   ;;  %1652 = vmatprep.subr.bf16.mxu1 %v1919_v33 }
  0xc0   :  { %1653 = vmatpush3.bf16.msra.mxu1 %v1920_v34 }
  0xc2   :  { %1243 = vmatpush2.bf16.msra.mxu0 %v1884_v35  ;;  %v1052_v35 = vld [vmem:[%s2126_s4] sm:$0x3]  ;;  %s1991_s4 = smov [#allocation7]  }
  0xc3   :  { %1244 = vmatprep.subr.bf16.mxu0 %v1889_v36  ;;  %v1057_v36 = vrot.slane %v1052_v35, %v204_v6  ;;  %s1451_s1 = sshll.u32 %s1991_s4, 4  ;;  %s1452_s1 = int_to_ptr.vmem [resolvable:$true] %s1451_s1 }
  0xc4   :  { %s1961_s3 = scalar_lea.vmem %s1452_s1, 128  ;;  %p1966_p11 = scmp.lt.s32.totalorder %s1452_s1, %s1452_s1 }
  0xc5   :  { %p1962_p10 = scmp.ne.s32.totalorder %s1452_s1, %s1961_s3  ;;  %p1967_p12 = scmp.lt.s32.totalorder %s1961_s3, %s1961_s3 }
  0xc6   :  { %1245 = vmatpush2.bf16.msra.mxu0 %v1887_v37  ;;  %v1061_v37 = vrot.slane %v1052_v35, %v208_v8 }
  0xc7   :  { %1246 = vmatprep.subr.bf16.mxu0 %v1892_v38  ;;  %p1968_p13 = por %p1967_p12, %p1966_p11 }
  0xc9   :  { %p1969_p0 = pnand %p1968_p13, %p1962_p10 }
  0xca   :  { %1247 = vmatpush2.bf16.msra.mxu0 %v1890_v39 }
  0xcb   :  { %1248 = vmatprep.subr.bf16.mxu0 %v1895_v40 }
  0xce   :  { %1249 = vmatpush2.bf16.msra.mxu0 %v1893_v41 }
  0xcf   :  { %1250 = vmatprep.subr.bf16.mxu0 %v1898_v42 }
  0xd2   :  { %1251 = vmatpush2.bf16.msra.mxu0 %v1896_v43 }
  0xd3   :  { %1252 = vmatprep.subr.bf16.mxu0 %v1901_v44 }
  0xd6   :  { %1253 = vmatpush2.bf16.msra.mxu0 %v1899_v45 }
  0xd7   :  { %1254 = vmatprep.subr.bf16.mxu0 %v1904_v46 }
  0xda   :  { %1255 = vmatpush2.bf16.msra.mxu0 %v1902_v47 }
 0x11d   :  { %v886_v60 = vpop.f32.mrf.mxu0 }
 0x11e   :  { %v927_v61 = vpop.f32.mrf.mxu1  ;;  %v887_v11 = vadd.f32 %v886_v60, %v205_v9 }
 0x11f   :  { %v888_v62 = vpop.f32.mrf.mxu0 }
 0x120   :  { %v929_v63 = vpop.f32.mrf.mxu1  ;;  %v889_v12 = vadd.f32 %v888_v62, %v209_v10  ;;  %v928_v13 = vadd.f32 %v927_v61, %v887_v11 }
 0x121   :  { %v890_v0 = vpop.f32.mrf.mxu0 }
 0x122   :  { %v931_v1 = vpop.f32.mrf.mxu1  ;;  %v930_v16 = vadd.f32 %v929_v63, %v889_v12 }
 0x123   :  { %v891_v2 = vpop.f32.mrf.mxu0 }
 0x124   :  { %v932_v3 = vpop.f32.mrf.mxu1 }
 0x15d   :  { %v968_v14 = vpop.f32.mrf.mxu0 }
 0x15e   :  { %v1009_v15 = vpop.f32.mrf.mxu1  ;;  %v969_v17 = vadd.f32 %v968_v14, %v928_v13 }
 0x15f   :  { %v970_v18 = vpop.f32.mrf.mxu0 }
 0x160   :  { %v1011_v19 = vpop.f32.mrf.mxu1  ;;  %v1010_v20 = vadd.f32 %v1009_v15, %v969_v17  ;;  %v971_v21 = vadd.f32 %v970_v18, %v930_v16 }
 0x161   :  { %v972_v22 = vpop.f32.mrf.mxu0 }
 0x162   :  { %v1013_v23 = vpop.f32.mrf.mxu1  ;;  %v1012_v24 = vadd.f32 %v1011_v19, %v971_v21  ;;  %v1016_v25 = vmax.f32 %v1010_v20, 0.0 }
 0x163   :  { %v973_v26 = vpop.f32.mrf.mxu0 }
 0x164   :  { %v1014_v27 = vpop.f32.mrf.mxu1  ;;  %v1017_v28 = vmax.f32 %v1012_v24, 0.0  ;;  %v1018_v30 = vpack.c.bf16 %v1016_v25, %v1016_v25 }
 0x166   :  { %v1019_v29 = vpack.c.bf16 %v1017_v28, %v1017_v28 }
 0x168   :  { %1256 = vmatprep.mubr.bf16.mxu0 %v1019_v29 }
 0x169   :  { %1257 = vmatmul.mubr.bf16.vlgmr.msra.gmra.mxu0 %v1018_v30 }
 0x229   :  { %v1258_v38 = vpop.f32.mrf.mxu0 }
 0x22a   :  { %v1259_v39 = vadd.f32 %v1258_v38, %v1057_v36 }
 0x22b   :  { %v1260_v40 = vpop.f32.mrf.mxu0 }
 0x22c   :  { %v1261_v41 = vadd.f32 %v1260_v40, %v1061_v37  ;;  %v1265_v42 = vmax.f32 %v1259_v39, 0.0 }
 0x22d   :  { %v1262_v43 = vpop.f32.mrf.mxu0 }
 0x22e   :  { %v1266_v44 = vmax.f32 %v1261_v41, 0.0  ;;  %v1267_v47 = vpack.c.bf16 %v1265_v42, %v1265_v42 }
 0x22f   :  { %v1263_v45 = vpop.f32.mrf.mxu0 }
 0x230   :  { %v1268_v46 = vpack.c.bf16 %v1266_v44, %v1266_v44 }
 0x232   :  { %1436 = vmatprep.mubr.bf16.mxu1 %v1268_v46 }
 0x233   :  { %1437 = vmatmul.mubr.bf16.vlgmr.msra.gmra.mxu1 %v1267_v47 }
 0x2f3   :  { %v1654_v48 = vpop.f32.mrf.mxu1 }
 0x2f5   :  { %v1655_v50 = vpop.f32.mrf.mxu1 }
 0x2f6   :  { %v1656_v51 = vadd.f32 %v1655_v50, %v1654_v48 }
 0x2f7   :  { %v1657_v52 = vpop.f32.mrf.mxu1 }
 0x2f8   :  { %v1439_v53 = vadd.f32 %v1656_v51, %v1621_v49 }
 0x2f9   :  { %v1658_v54 = vpop.f32.mrf.mxu1 }
 0x2fa   :  { %1444 = vst [vmem:[#allocation7] sm:$0xff] %v1439_v53 }
 0x2fb   :  { %1972 = shalt.err (!%p1969_p0)
}
 0x2fc   :  { %1454 = dma.vmem_to_hbm [thread:$0]  %s1452_s1, 128, %s2129_s7, [#allocation4]  }
 0x2fd   :  { %1985 = dma.done.wait [#allocation4], 128  }
 0x2fe   :  { %1986 = vsyncadd [#allocation4], 4294967168 }
 0x2ff   :  { %1458 = vsyncpa [#allocation3], 1 }
 0x300   :  { %1459 = vsyncpa [#allocation6], 1 }
 0x301   :  { %1460 = vsyncpa [#allocation4], 1 }

</bundles_post_ra>
